<compile_context>
chip_gen: v7x
topology: tpu7x:2x2x1
jax: 0.10.0
libtpu: 0.0.40
codegen_flags: <defaults>
</compile_context>

<pallas_src>
import jax
import jax.numpy as jnp
from jax import lax
from jax.experimental import pallas as pl
from jax.experimental.pallas import tpu as pltpu


def retention_forward(x, params, num_head, dim_qkv):
    """x: (batch, L, dim) float32 -> (batch, L, num_head*dim_qkv)."""
    batch, L, dim = x.shape
    (phazor, amplitude, conv_init, wqT, bq, wkT, bk, wvT, bv) = params
    nh, dq = num_head, dim_qkv
    dout = nh * dq
    assert dim == dout, "out_weight=False requires dim == num_head * dim_qkv"

    # ---------------- glue: batch-invariant tables (plain JAX, once) ----------------
    phase = phazor / jnp.abs(phazor)                         # (nh, dq) complex, |.|=1
    amp = jax.nn.sigmoid(amplitude).astype(jnp.float32)      # (nh,)
    t = jnp.arange(L, dtype=jnp.float32)

    phase_pow = phase[None, :, :] ** t[:, None, None].astype(jnp.complex64)  # (L, nh, dq)
    cos_t = jnp.real(phase_pow).astype(jnp.float32)
    sin_t = jnp.imag(phase_pow).astype(jnp.float32)

    decay_pos = (amp[None, :] ** t[:, None])[:, :, None]     # (L, nh, 1)  amp^i
    decay_neg = (amp[None, :] ** (-t)[:, None])[:, :, None]  # (L, nh, 1)  amp^{-j}

    def interleave(re, im):
        # (L, nh, dq) x2 -> (L, 2*dout), per-head column layout [re(dq) | im(dq)]
        return jnp.stack([re, im], axis=2).reshape(L, 2 * dout)

    # Rotation (+ decay) tables, bf16 (they only feed MXU-bound products).
    qrot_tab = interleave(cos_t * decay_pos, sin_t * decay_pos).astype(jnp.bfloat16)
    krot_tab = interleave(cos_t * decay_neg, sin_t * decay_neg).astype(jnp.bfloat16)

    # Re/Im(phz^{t+1}) tables for the cross chunk (phz = phase * amp).
    phz = phase * amp[:, None]
    phz_p1 = phz[None, :, :] ** t[:, None, None].astype(jnp.complex64) * phz[None, :, :]
    cross_tab = interleave(jnp.real(phz_p1).astype(jnp.float32),
                           jnp.imag(phz_p1).astype(jnp.float32)).astype(jnp.bfloat16)

    # Block-diagonal recurrent-state weight: one matmul produces the cross chunk
    # for all heads already in the final (L, dout) layout.
    hsel = jnp.eye(nh, dtype=jnp.float32)
    blk = jnp.concatenate([jnp.real(conv_init), -jnp.imag(conv_init)],
                          axis=1).astype(jnp.float32)                # (nh, 2dq, dq)
    w_cross = (hsel[:, None, :, None] * blk[:, :, None, :]).reshape(
        2 * dout, dout).astype(jnp.bfloat16)                         # (2*dout, dout)

    # Per-head column selector for the block-diag-equivalent inner matmul.
    hmask = jnp.repeat(jnp.eye(nh, dtype=jnp.float32), dq, axis=1)   # (nh, dout)

    # Fused projection weights: [Wq_dup | Wk_dup | Wv], q/k columns duplicated per
    # head so the interleaved [re|im] multiplier tables apply without any concat.
    def dup_cols(w):
        w3 = w.reshape(dim, nh, dq)
        return jnp.stack([w3, w3], axis=2).reshape(dim, 2 * dout)

    def dup_vec(b):
        b3 = b.reshape(nh, dq)
        return jnp.stack([b3, b3], axis=1).reshape(2 * dout)

    w_fused = jnp.concatenate([dup_cols(wqT), dup_cols(wkT), wvT],
                              axis=1).astype(jnp.bfloat16)           # (dim, 5*dout)
    b_fused = jnp.concatenate([dup_vec(bq), dup_vec(bk), bv]).reshape(
        1, 5 * dout).astype(jnp.float32)

    # ---------------- kernel ----------------
    def kernel(x_ref, w_ref, b_ref, qrot_ref, krot_ref, ctab_ref,
               wcross_ref, hmask_ref, o_ref):
        x_b = x_ref[0]                                               # (L, dim) f32
        # Fused (duplicated) Q/K/V projection: one bf16 MXU matmul, f32 accumulate.
        proj = jnp.dot(x_b.astype(jnp.bfloat16), w_ref[...],
                       preferred_element_type=jnp.float32) + b_ref[...]  # (L, 5*dout)
        q_dup = proj[:, :2 * dout]
        k_dup = proj[:, 2 * dout:4 * dout]
        v = proj[:, 4 * dout:5 * dout]

        # Full-width lane-dense elementwise (rotation + decay folded in tables).
        q_rot = (q_dup * qrot_ref[...]).astype(jnp.bfloat16)         # (L, 2*dout)
        k_rot = (k_dup * krot_ref[...]).astype(jnp.bfloat16)
        q_crs = (q_dup * ctab_ref[...]).astype(jnp.bfloat16)

        # Cross chunk for all heads in one dot (block-diag weight).
        acc = jnp.dot(q_crs, wcross_ref[...],
                      preferred_element_type=jnp.float32)            # (L, dout) f32

        # Causal select (decay already folded into q_rot/k_rot). Computed per grid
        # step (cheap compares); not cached in scratch so megacore grid sharding
        # stays safe.
        ii = lax.broadcasted_iota(jnp.int32, (L, L), 0)
        jj = lax.broadcasted_iota(jnp.int32, (L, L), 1)
        tril = (ii >= jj).astype(jnp.float32)

        for h in range(nh):
            c0 = 2 * h * dq
            # Fused re+im contraction (depth 2*dq) from a single static slice.
            qk = lax.dot_general(q_rot[:, c0:c0 + 2 * dq],
                                 k_rot[:, c0:c0 + 2 * dq],
                                 (((1,), (1,)), ((), ())),
                                 preferred_element_type=jnp.float32)  # (L, L)
            qk = (qk * tril).astype(jnp.bfloat16)
            # Head-masked V -> full-width N=dout dot; per-head outputs accumulate
            # lane-dense into acc (block-diag fusion, no concat / sub-lane store).
            vh = (v * hmask_ref[h:h + 1, :]).astype(jnp.bfloat16)     # (L, dout)
            acc = acc + jnp.dot(qk, vh, preferred_element_type=jnp.float32)

        o_ref[0] = acc.astype(o_ref.dtype)                            # lane-dense store

    # ---------------- pallas_call ----------------
    flops = batch * (
        2 * L * dim * 5 * dout                 # fused projection
        + 2 * L * (2 * dout) * dout            # cross chunk
        + nh * (2 * L * L * 2 * dq             # per-head qk
                + 2 * L * L * dout))           # inner (N-fused)
    bytes_accessed = (batch * (L * dim * 4 + L * dout * 4)
                      + dim * 5 * dout * 2 + 5 * dout * 4
                      + 3 * L * 2 * dout * 2
                      + 2 * dout * dout * 2 + nh * dout * 4)

    # VMEM limit: ~3/4 of physical (48 MiB on v7x's 64 MiB), capped at 64 MiB on
    # the 128 MiB generations (v5e/v6e).
    try:
        vmem_cap = getattr(pltpu.get_tpu_info(), "vmem_capacity_bytes", None)
    except Exception:
        vmem_cap = None
    if not vmem_cap:
        vmem_cap = 128 * 1024 * 1024
    vmem_limit = max(32 * 1024 * 1024, min(64 * 1024 * 1024, int(vmem_cap) * 3 // 4))

    out = pl.pallas_call(
        kernel,
        out_shape=jax.ShapeDtypeStruct((batch, L, dout), x.dtype),
        grid_spec=pltpu.PrefetchScalarGridSpec(
            num_scalar_prefetch=0,
            grid=(batch,),
            in_specs=[
                pl.BlockSpec((1, L, dim), lambda b: (b, 0, 0)),       # x
                pl.BlockSpec((dim, 5 * dout), lambda b: (0, 0)),      # fused QKV weight (bf16)
                pl.BlockSpec((1, 5 * dout), lambda b: (0, 0)),        # fused QKV bias
                pl.BlockSpec((L, 2 * dout), lambda b: (0, 0)),        # q rotation+decay table
                pl.BlockSpec((L, 2 * dout), lambda b: (0, 0)),        # k rotation+decay table
                pl.BlockSpec((L, 2 * dout), lambda b: (0, 0)),        # Re/Im(phz^{t+1}) table
                pl.BlockSpec((2 * dout, dout), lambda b: (0, 0)),     # block-diag [Re(C); -Im(C)]
                pl.BlockSpec((nh, dout), lambda b: (0, 0)),           # head column masks
            ],
            out_specs=pl.BlockSpec((1, L, dout), lambda b: (b, 0, 0)),
        ),
        compiler_params=pltpu.CompilerParams(
            dimension_semantics=("parallel",),
            vmem_limit_bytes=vmem_limit),
        cost_estimate=pl.CostEstimate(flops=flops, transcendentals=0,
                                      bytes_accessed=bytes_accessed),
    )(x, w_fused, b_fused, qrot_tab, krot_tab, cross_tab, w_cross, hmask)

    return out


def retention_ref(x, params, num_head, dim_qkv):
    """Pure-JAX reference mirroring the PyTorch forward (out_weight=False)."""
    batch, L, dim = x.shape
    (phazor, amplitude, conv_init, wqT, bq, wkT, bk, wvT, bv) = params
    q = (x @ wqT + bq).reshape(batch, L, num_head, dim_qkv).astype(jnp.complex64)
    k = (x @ wkT + bk).reshape(batch, L, num_head, dim_qkv).astype(jnp.complex64)
    v = (x @ wvT + bv).reshape(batch, L, num_head, dim_qkv).astype(jnp.complex64)
    phase = phazor / jnp.abs(phazor)
    amp = jax.nn.sigmoid(amplitude)
    phz = phase * amp[:, None]
    t = jnp.arange(L, dtype=jnp.float32)
    phase_prog = phase[None] ** t[:, None, None].astype(jnp.complex64)
    phase_prog_inv = phase[None] ** (-t)[:, None, None].astype(jnp.complex64)
    phz_prog = phz[None] ** t[:, None, None].astype(jnp.complex64)
    cross = jnp.einsum('blhi,lhi,hij->blhj', q, phz_prog * phz[None], conv_init)
    tril = jnp.tril(jnp.ones((L, L), jnp.float32))
    mexp = (t[:, None] - t[None, :]) * tril
    mask = (amp[:, None, None] ** mexp[None]) * tril
    qk = jnp.einsum('bihd,bjhd->bhij', q * phase_prog[None], k * phase_prog_inv[None])
    inner = jnp.einsum('bhij,bjhd->bihd', qk * mask[None].astype(jnp.complex64), v)
    return jnp.real(inner + cross).reshape(batch, L, num_head * dim_qkv).astype(x.dtype)


def init_params(key, dim, dim_qkv, num_head):
    ks = jax.random.split(key, 12)
    phazor = (jax.random.normal(ks[0], (num_head, dim_qkv)) +
              1j * jax.random.normal(ks[1], (num_head, dim_qkv))).astype(jnp.complex64)
    amplitude = jax.random.normal(ks[2], (num_head,), dtype=jnp.float32)
    conv_init = (jax.random.normal(ks[3], (num_head, dim_qkv, dim_qkv)) +
                 1j * jax.random.normal(ks[4], (num_head, dim_qkv, dim_qkv))
                 ).astype(jnp.complex64)
    lim = 1.0 / jnp.sqrt(dim)
    dout = num_head * dim_qkv
    wqT = jax.random.uniform(ks[5], (dim, dout), jnp.float32, -lim, lim)
    bq = jax.random.uniform(ks[6], (dout,), jnp.float32, -lim, lim)
    wkT = jax.random.uniform(ks[7], (dim, dout), jnp.float32, -lim, lim)
    bk = jax.random.uniform(ks[8], (dout,), jnp.float32, -lim, lim)
    wvT = jax.random.uniform(ks[9], (dim, dout), jnp.float32, -lim, lim)
    bv = jax.random.uniform(ks[10], (dout,), jnp.float32, -lim, lim)
    return (phazor, amplitude, conv_init, wqT, bq, wkT, bk, wvT, bv)


if __name__ == "__main__":
    dim, dim_qkv, num_head = 32, 8, 4     # dim == dim_qkv * num_head (out_weight=False)
    batch, seq = 2, 8

    key = jax.random.PRNGKey(0)
    kx, kp = jax.random.split(key)
    x = jax.random.normal(kx, (batch, seq, dim), dtype=jnp.float32)
    params = init_params(kp, dim, dim_qkv, num_head)

    out = retention_forward(x, params, num_head, dim_qkv)
    out = jax.block_until_ready(out)

    ref = jax.block_until_ready(retention_ref(x, params, num_head, dim_qkv))
    assert out.shape == (batch, seq, num_head * dim_qkv)
    err = float(jnp.max(jnp.abs(out - ref)))
    scale = float(jnp.max(jnp.abs(ref)))
    # bf16 MXU operands + bf16 tables (f32 accumulation) -> ~1% relative error.
    assert err < 3e-2 * scale + 3e-2, (err, scale)

    print("KERNEL_OK")
</pallas_src>

<mosaic_0001>
module attributes {stable_mosaic.version = 11 : i64} {
  func.func @kernel(%arg0: i32, %arg1: memref<1x8x32xf32, #tpu.memory_space<vmem>>, %arg2: memref<32x160xbf16, #tpu.memory_space<vmem>>, %arg3: memref<1x160xf32, #tpu.memory_space<vmem>>, %arg4: memref<8x64xbf16, #tpu.memory_space<vmem>>, %arg5: memref<8x64xbf16, #tpu.memory_space<vmem>>, %arg6: memref<8x64xbf16, #tpu.memory_space<vmem>>, %arg7: memref<64x32xbf16, #tpu.memory_space<vmem>>, %arg8: memref<4x32xf32, #tpu.memory_space<vmem>>, %arg9: memref<1x8x32xf32, #tpu.memory_space<vmem>>) attributes {dimension_semantics = [#tpu.dimension_semantics<parallel>], iteration_bounds = array<i64: 2>, scalar_prefetch = 0 : i64, scratch_operands = 0 : i64, tpu.core_type = #tpu.core_type<tc>, window_params = [{transform_indices = @transform_0, window_bounds = array<i64: 1, 8, 32>}, {pipeline_mode = #tpu.pipeline_mode<synchronous>, transform_indices = @transform_1, window_bounds = array<i64: 32, 160>}, {pipeline_mode = #tpu.pipeline_mode<synchronous>, transform_indices = @transform_2, window_bounds = array<i64: 1, 160>}, {pipeline_mode = #tpu.pipeline_mode<synchronous>, transform_indices = @transform_3, window_bounds = array<i64: 8, 64>}, {pipeline_mode = #tpu.pipeline_mode<synchronous>, transform_indices = @transform_4, window_bounds = array<i64: 8, 64>}, {pipeline_mode = #tpu.pipeline_mode<synchronous>, transform_indices = @transform_5, window_bounds = array<i64: 8, 64>}, {pipeline_mode = #tpu.pipeline_mode<synchronous>, transform_indices = @transform_6, window_bounds = array<i64: 64, 32>}, {pipeline_mode = #tpu.pipeline_mode<synchronous>, transform_indices = @transform_7, window_bounds = array<i64: 4, 32>}, {transform_indices = @transform_8, window_bounds = array<i64: 1, 8, 32>}]} {
    %c0 = arith.constant 0 : index
    %c0_0 = arith.constant 0 : index
    %c0_1 = arith.constant 0 : index
    %0 = vector.load %arg1[%c0, %c0_0, %c0_1] : memref<1x8x32xf32, #tpu.memory_space<vmem>>, vector<1x8x32xf32>
    %1 = vector.shape_cast %0 : vector<1x8x32xf32> to vector<8x32xf32>
    %2 = arith.truncf %1 : vector<8x32xf32> to vector<8x32xbf16>
    %c0_2 = arith.constant 0 : index
    %c0_3 = arith.constant 0 : index
    %3 = vector.load %arg2[%c0_2, %c0_3] : memref<32x160xbf16, #tpu.memory_space<vmem>>, vector<32x160xbf16>
    %cst = arith.constant dense<0.000000e+00> : vector<8x160xf32>
    %4 = tpu.matmul %2, %3, %cst {dimension_numbers = #tpu.dot_dimension_numbers<[1], [0], [0], [1], [0, 0, 1, 1], [], []>} : vector<8x32xbf16>, vector<32x160xbf16>, vector<8x160xf32> -> vector<8x160xf32>
    %c0_4 = arith.constant 0 : index
    %c0_5 = arith.constant 0 : index
    %5 = vector.load %arg3[%c0_4, %c0_5] : memref<1x160xf32, #tpu.memory_space<vmem>>, vector<1x160xf32>
    %6 = vector.broadcast %5 : vector<1x160xf32> to vector<8x160xf32>
    %7 = arith.addf %4, %6 : vector<8x160xf32>
    %8 = vector.extract_strided_slice %7 {offsets = [0, 0], sizes = [8, 64], strides = [1, 1]} : vector<8x160xf32> to vector<8x64xf32>
    %9 = vector.extract_strided_slice %7 {offsets = [0, 64], sizes = [8, 64], strides = [1, 1]} : vector<8x160xf32> to vector<8x64xf32>
    %10 = vector.extract_strided_slice %7 {offsets = [0, 128], sizes = [8, 32], strides = [1, 1]} : vector<8x160xf32> to vector<8x32xf32>
    %c0_6 = arith.constant 0 : index
    %c0_7 = arith.constant 0 : index
    %11 = vector.load %arg4[%c0_6, %c0_7] : memref<8x64xbf16, #tpu.memory_space<vmem>>, vector<8x64xbf16>
    %12 = arith.extf %11 : vector<8x64xbf16> to vector<8x64xf32>
    %13 = arith.mulf %8, %12 : vector<8x64xf32>
    %14 = arith.truncf %13 : vector<8x64xf32> to vector<8x64xbf16>
    %c0_8 = arith.constant 0 : index
    %c0_9 = arith.constant 0 : index
    %15 = vector.load %arg5[%c0_8, %c0_9] : memref<8x64xbf16, #tpu.memory_space<vmem>>, vector<8x64xbf16>
    %16 = arith.extf %15 : vector<8x64xbf16> to vector<8x64xf32>
    %17 = arith.mulf %9, %16 : vector<8x64xf32>
    %18 = arith.truncf %17 : vector<8x64xf32> to vector<8x64xbf16>
    %c0_10 = arith.constant 0 : index
    %c0_11 = arith.constant 0 : index
    %19 = vector.load %arg6[%c0_10, %c0_11] : memref<8x64xbf16, #tpu.memory_space<vmem>>, vector<8x64xbf16>
    %20 = arith.extf %19 : vector<8x64xbf16> to vector<8x64xf32>
    %21 = arith.mulf %8, %20 : vector<8x64xf32>
    %22 = arith.truncf %21 : vector<8x64xf32> to vector<8x64xbf16>
    %c0_12 = arith.constant 0 : index
    %c0_13 = arith.constant 0 : index
    %23 = vector.load %arg7[%c0_12, %c0_13] : memref<64x32xbf16, #tpu.memory_space<vmem>>, vector<64x32xbf16>
    %cst_14 = arith.constant dense<0.000000e+00> : vector<8x32xf32>
    %24 = tpu.matmul %22, %23, %cst_14 {dimension_numbers = #tpu.dot_dimension_numbers<[1], [0], [0], [1], [0, 0, 1, 1], [], []>} : vector<8x64xbf16>, vector<64x32xbf16>, vector<8x32xf32> -> vector<8x32xf32>
    %25 = tpu.iota {dimensions = array<i32: 0>} : vector<8x8xi32>
    %26 = tpu.iota {dimensions = array<i32: 1>} : vector<8x8xi32>
    %27 = arith.cmpi sge, %25, %26 : vector<8x8xi32>
    %28 = arith.extui %27 : vector<8x8xi1> to vector<8x8xi32>
    %29 = arith.sitofp %28 : vector<8x8xi32> to vector<8x8xf32>
    %30 = vector.extract_strided_slice %14 {offsets = [0, 0], sizes = [8, 16], strides = [1, 1]} : vector<8x64xbf16> to vector<8x16xbf16>
    %31 = vector.extract_strided_slice %18 {offsets = [0, 0], sizes = [8, 16], strides = [1, 1]} : vector<8x64xbf16> to vector<8x16xbf16>
    %cst_15 = arith.constant dense<0.000000e+00> : vector<8x8xf32>
    %32 = tpu.matmul %30, %31, %cst_15 {dimension_numbers = #tpu.dot_dimension_numbers<[1], [1], [0], [0], [0, 0, 1, 0], [], []>} : vector<8x16xbf16>, vector<8x16xbf16>, vector<8x8xf32> -> vector<8x8xf32>
    %33 = arith.mulf %32, %29 : vector<8x8xf32>
    %34 = arith.truncf %33 : vector<8x8xf32> to vector<8x8xbf16>
    %c0_16 = arith.constant 0 : index
    %c0_17 = arith.constant 0 : index
    %35 = vector.load %arg8[%c0_16, %c0_17] : memref<4x32xf32, #tpu.memory_space<vmem>>, vector<1x32xf32>
    %36 = vector.broadcast %35 : vector<1x32xf32> to vector<8x32xf32>
    %37 = arith.mulf %10, %36 : vector<8x32xf32>
    %38 = arith.truncf %37 : vector<8x32xf32> to vector<8x32xbf16>
    %cst_18 = arith.constant dense<0.000000e+00> : vector<8x32xf32>
    %39 = tpu.matmul %34, %38, %cst_18 {dimension_numbers = #tpu.dot_dimension_numbers<[1], [0], [0], [1], [0, 0, 1, 1], [], []>} : vector<8x8xbf16>, vector<8x32xbf16>, vector<8x32xf32> -> vector<8x32xf32>
    %40 = arith.addf %24, %39 : vector<8x32xf32>
    %41 = vector.extract_strided_slice %14 {offsets = [0, 16], sizes = [8, 16], strides = [1, 1]} : vector<8x64xbf16> to vector<8x16xbf16>
    %42 = vector.extract_strided_slice %18 {offsets = [0, 16], sizes = [8, 16], strides = [1, 1]} : vector<8x64xbf16> to vector<8x16xbf16>
    %cst_19 = arith.constant dense<0.000000e+00> : vector<8x8xf32>
    %43 = tpu.matmul %41, %42, %cst_19 {dimension_numbers = #tpu.dot_dimension_numbers<[1], [1], [0], [0], [0, 0, 1, 0], [], []>} : vector<8x16xbf16>, vector<8x16xbf16>, vector<8x8xf32> -> vector<8x8xf32>
    %44 = arith.mulf %43, %29 : vector<8x8xf32>
    %45 = arith.truncf %44 : vector<8x8xf32> to vector<8x8xbf16>
    %c1 = arith.constant 1 : index
    %c0_20 = arith.constant 0 : index
    %46 = vector.load %arg8[%c1, %c0_20] : memref<4x32xf32, #tpu.memory_space<vmem>>, vector<1x32xf32>
    %47 = vector.broadcast %46 : vector<1x32xf32> to vector<8x32xf32>
    %48 = arith.mulf %10, %47 : vector<8x32xf32>
    %49 = arith.truncf %48 : vector<8x32xf32> to vector<8x32xbf16>
    %cst_21 = arith.constant dense<0.000000e+00> : vector<8x32xf32>
    %50 = tpu.matmul %45, %49, %cst_21 {dimension_numbers = #tpu.dot_dimension_numbers<[1], [0], [0], [1], [0, 0, 1, 1], [], []>} : vector<8x8xbf16>, vector<8x32xbf16>, vector<8x32xf32> -> vector<8x32xf32>
    %51 = arith.addf %40, %50 : vector<8x32xf32>
    %52 = vector.extract_strided_slice %14 {offsets = [0, 32], sizes = [8, 16], strides = [1, 1]} : vector<8x64xbf16> to vector<8x16xbf16>
    %53 = vector.extract_strided_slice %18 {offsets = [0, 32], sizes = [8, 16], strides = [1, 1]} : vector<8x64xbf16> to vector<8x16xbf16>
    %cst_22 = arith.constant dense<0.000000e+00> : vector<8x8xf32>
    %54 = tpu.matmul %52, %53, %cst_22 {dimension_numbers = #tpu.dot_dimension_numbers<[1], [1], [0], [0], [0, 0, 1, 0], [], []>} : vector<8x16xbf16>, vector<8x16xbf16>, vector<8x8xf32> -> vector<8x8xf32>
    %55 = arith.mulf %54, %29 : vector<8x8xf32>
    %56 = arith.truncf %55 : vector<8x8xf32> to vector<8x8xbf16>
    %c2 = arith.constant 2 : index
    %c0_23 = arith.constant 0 : index
    %57 = vector.load %arg8[%c2, %c0_23] : memref<4x32xf32, #tpu.memory_space<vmem>>, vector<1x32xf32>
    %58 = vector.broadcast %57 : vector<1x32xf32> to vector<8x32xf32>
    %59 = arith.mulf %10, %58 : vector<8x32xf32>
    %60 = arith.truncf %59 : vector<8x32xf32> to vector<8x32xbf16>
    %cst_24 = arith.constant dense<0.000000e+00> : vector<8x32xf32>
    %61 = tpu.matmul %56, %60, %cst_24 {dimension_numbers = #tpu.dot_dimension_numbers<[1], [0], [0], [1], [0, 0, 1, 1], [], []>} : vector<8x8xbf16>, vector<8x32xbf16>, vector<8x32xf32> -> vector<8x32xf32>
    %62 = arith.addf %51, %61 : vector<8x32xf32>
    %63 = vector.extract_strided_slice %14 {offsets = [0, 48], sizes = [8, 16], strides = [1, 1]} : vector<8x64xbf16> to vector<8x16xbf16>
    %64 = vector.extract_strided_slice %18 {offsets = [0, 48], sizes = [8, 16], strides = [1, 1]} : vector<8x64xbf16> to vector<8x16xbf16>
    %cst_25 = arith.constant dense<0.000000e+00> : vector<8x8xf32>
    %65 = tpu.matmul %63, %64, %cst_25 {dimension_numbers = #tpu.dot_dimension_numbers<[1], [1], [0], [0], [0, 0, 1, 0], [], []>} : vector<8x16xbf16>, vector<8x16xbf16>, vector<8x8xf32> -> vector<8x8xf32>
    %66 = arith.mulf %65, %29 : vector<8x8xf32>
    %67 = arith.truncf %66 : vector<8x8xf32> to vector<8x8xbf16>
    %c3 = arith.constant 3 : index
    %c0_26 = arith.constant 0 : index
    %68 = vector.load %arg8[%c3, %c0_26] : memref<4x32xf32, #tpu.memory_space<vmem>>, vector<1x32xf32>
    %69 = vector.broadcast %68 : vector<1x32xf32> to vector<8x32xf32>
    %70 = arith.mulf %10, %69 : vector<8x32xf32>
    %71 = arith.truncf %70 : vector<8x32xf32> to vector<8x32xbf16>
    %cst_27 = arith.constant dense<0.000000e+00> : vector<8x32xf32>
    %72 = tpu.matmul %67, %71, %cst_27 {dimension_numbers = #tpu.dot_dimension_numbers<[1], [0], [0], [1], [0, 0, 1, 1], [], []>} : vector<8x8xbf16>, vector<8x32xbf16>, vector<8x32xf32> -> vector<8x32xf32>
    %73 = arith.addf %62, %72 : vector<8x32xf32>
    %c0_28 = arith.constant 0 : index
    %c0_29 = arith.constant 0 : index
    %c0_30 = arith.constant 0 : index
    %74 = vector.load %arg9[%c0_28, %c0_29, %c0_30] : memref<1x8x32xf32, #tpu.memory_space<vmem>>, vector<1x8x32xf32>
    %75 = vector.shape_cast %74 : vector<1x8x32xf32> to vector<8x32xf32>
    %76 = vector.shape_cast %73 : vector<8x32xf32> to vector<1x8x32xf32>
    tpu.vector_store %arg9[%c0_28, %c0_29, %c0_30], %76 {strides = array<i32>} : memref<1x8x32xf32, #tpu.memory_space<vmem>>, vector<1x8x32xf32>,
    return
  }
  func.func @transform_0(%arg0: i32) -> (i32, i32, i32) {
    %c0_i32 = arith.constant 0 : i32
    %c0_i32_0 = arith.constant 0 : i32
    %c0_i32_1 = arith.constant 0 : i32
    return %arg0, %c0_i32, %c0_i32_0 : i32, i32, i32
  }
  func.func @transform_1(%arg0: i32) -> (i32, i32) {
    %c0_i32 = arith.constant 0 : i32
    %c0_i32_0 = arith.constant 0 : i32
    %c0_i32_1 = arith.constant 0 : i32
    return %c0_i32, %c0_i32_0 : i32, i32
  }
  func.func @transform_2(%arg0: i32) -> (i32, i32) {
    %c0_i32 = arith.constant 0 : i32
    %c0_i32_0 = arith.constant 0 : i32
    %c0_i32_1 = arith.constant 0 : i32
    return %c0_i32, %c0_i32_0 : i32, i32
  }
  func.func @transform_3(%arg0: i32) -> (i32, i32) {
    %c0_i32 = arith.constant 0 : i32
    %c0_i32_0 = arith.constant 0 : i32
    %c0_i32_1 = arith.constant 0 : i32
    return %c0_i32, %c0_i32_0 : i32, i32
  }
  func.func @transform_4(%arg0: i32) -> (i32, i32) {
    %c0_i32 = arith.constant 0 : i32
    %c0_i32_0 = arith.constant 0 : i32
    %c0_i32_1 = arith.constant 0 : i32
    return %c0_i32, %c0_i32_0 : i32, i32
  }
  func.func @transform_5(%arg0: i32) -> (i32, i32) {
    %c0_i32 = arith.constant 0 : i32
    %c0_i32_0 = arith.constant 0 : i32
    %c0_i32_1 = arith.constant 0 : i32
    return %c0_i32, %c0_i32_0 : i32, i32
  }
  func.func @transform_6(%arg0: i32) -> (i32, i32) {
    %c0_i32 = arith.constant 0 : i32
    %c0_i32_0 = arith.constant 0 : i32
    %c0_i32_1 = arith.constant 0 : i32
    return %c0_i32, %c0_i32_0 : i32, i32
  }
  func.func @transform_7(%arg0: i32) -> (i32, i32) {
    %c0_i32 = arith.constant 0 : i32
    %c0_i32_0 = arith.constant 0 : i32
    %c0_i32_1 = arith.constant 0 : i32
    return %c0_i32, %c0_i32_0 : i32, i32
  }
  func.func @transform_8(%arg0: i32) -> (i32, i32, i32) {
    %c0_i32 = arith.constant 0 : i32
    %c0_i32_0 = arith.constant 0 : i32
    %c0_i32_1 = arith.constant 0 : i32
    return %arg0, %c0_i32, %c0_i32_0 : i32, i32, i32
  }
}

</mosaic_0001>

<bundles_post_ra>
// kernel: tpu_custom_call.1
= control target key start
LH: loop header
LB: loop body
LE: loop exit
PB: predicated region body
PF: predicated region fallthrough
CT: control target
= control target key end

     0   :  { %13 = vsyncpa [#allocation3], 0  ;;  %s2247_s0 = inlined_call_operand.hbm [shape: f32[2,8,32], index: 0, kind: input, shape index: {}]   ;;  %s2248_s1 = inlined_call_operand.hbm [shape: bf16[32,160], index: 1, kind: input, shape index: {}]   ;;  %s2249_s2 = inlined_call_operand.hbm [shape: f32[1,160], index: 2, kind: input, shape index: {}]   ;;  %s2250_s3 = inlined_call_operand.hbm [shape: bf16[8,64], index: 3, kind: input, shape index: {}]   ;;  %s2251_s4 = inlined_call_operand.hbm [shape: bf16[8,64], index: 4, kind: input, shape index: {}]   ;;  %s2252_s5 = inlined_call_operand.hbm [shape: bf16[8,64], index: 5, kind: input, shape index: {}]   ;;  %s2253_s6 = inlined_call_operand.hbm [shape: bf16[64,32], index: 6, kind: input, shape index: {}]   ;;  %s2254_s7 = inlined_call_operand.hbm [shape: f32[4,32], index: 7, kind: input, shape index: {}]   ;;  %s2255_s8 = inlined_call_operand.hbm [shape: f32[2,8,32], index: 8, kind: output, shape index: {}]  }
   0x1   :  { %15 = vsyncpa [#allocation3 + $0x1], 0 }
   0x2   :  { %16 = vsyncpa [#allocation6], 0 }
   0x3   :  { %17 = vsyncpa [#allocation9], 0 }
   0x4   :  { %18 = vsyncpa [#allocation12], 0 }
   0x5   :  { %19 = vsyncpa [#allocation15], 0 }
   0x6   :  { %20 = vsyncpa [#allocation4], 0 }
   0x7   :  { %22 = vsyncpa [#allocation4 + $0x1], 0  ;;  %s1839_s27 = smov 0   ;;  %s1841_s28 = smov 0  }
   0x8   :  { %s1843_s29 = smov 0   ;;  %s1845_s30 = smov 0  }
   0x9 LB: > { %s1771_s9 = smov [#allocation5]   ;;  %s1860_s11 = sadd.s32 4294967295, %s1769_s30   ;;  %s1769_s30 = sphi %s1845_s30, %s2282_s30   ;;  %s1765_s29 = sphi %s1843_s29, %s2281_s29   ;;  %s1761_s28 = sphi %s1841_s28, %s2280_s28   ;;  %s1757_s27 = sphi %s1839_s27, %s2279_s27  }
   0xa   : > { %s244_s10 = sshll.u32 %s1771_s9, 4  ;;  %p1175_p0 = scmp.ge.s32.totalorder %s1769_s30, 1  ;;  %s1865_s10 = int_to_ptr.vmem [resolvable:$true] %s244_s10 }
   0xb   : > { %p2256_p1 = scmp.eq.s32.totalorder %s1860_s11, 0  ;;  %p232_p2 = scmp.lt.s32.totalorder %s1769_s30, 3 }
   0xc   : > { %s1772_s13 = smov [#allocation8]   ;;  %s1773_s16 = smov [#allocation11]  }
   0xd   : > { %p1867_p3 = pnand %p1175_p0, %p232_p2  ;;  %s269_s14 = sshll.u32 %s1772_s13, 4  ;;  %s1880_s14 = int_to_ptr.vmem [resolvable:$true] %s269_s14 }
   0xe   : > { %s291_s17 = sshll.u32 %s1773_s16, 4  ;;  %s1461_s20 = scalar_lea.hbm %s2248_s1, 512  ;;  %s1882_s17 = int_to_ptr.vmem [resolvable:$true] %s291_s17 }
   0xf   : > { %s2259_s12 = scalar_select %p1867_p3, 1, 0 }
  0x10   : > { %p1352_p5 = pneg %p1867_p3  ;;  %p1462_p7 = scmp.ne.s32.totalorder %s2248_s1, %s1461_s20 }
  0x11   : > { %p1468_p11 = scmp.lt.u32.totalorder %s1461_s20, %s2248_s1 }
  0x12   : > { %p1876_p6 = pnand %p1352_p5, %p2256_p1 }
  0x14   : > { %p1892_p8 = pneg %p1876_p6 }
  0x16   : > { %p1464_p9 = pnand %p1892_p8, %p1462_p7 }
  0x18   : > { %p1465_p10 = pneg %p1464_p9 }
  0x1a   : > { %p1470_p12 = pnand %p1468_p11, %p1465_p10 }
  0x1c   : > { %1473 = shalt.err (!%p1470_p12)
}
  0x1d   : > { %s1474_s26 = scalar_lea.vmem %s1865_s10, 512  ;;  %p1482_p5 = scmp.lt.s32.totalorder %s1865_s10, %s1865_s10 }
  0x1e   : > { %p1475_p13 = scmp.ne.s32.totalorder %s1865_s10, %s1474_s26  ;;  %p1483_p4 = scmp.lt.s32.totalorder %s1474_s26, %s1474_s26 }
  0x20   : > { %p1477_p0 = pnand %p1475_p13, %p1892_p8  ;;  %p1484_p7 = por %p1483_p4, %p1482_p5 }
  0x22   : > { %p1478_p2 = pneg %p1477_p0 }
  0x24   : > { %p1485_p9 = pnand %p1484_p7, %p1478_p2 }
  0x26   : > { %1488 = shalt.err (!%p1485_p9)
}
  0x27   : > { %s1774_s9 = smov 128   ;;  %s1775_s13 = smov 8  }
  0x28   : > { %1355 = dma.hbm_to_vmem [thread:$0]  (!%p1876_p6), %s2248_s1, 512, %s1865_s10, [#allocation6], %s1774_s9, %s1774_s9, %s1775_s13  }
  0x29   : > { %s1489_s21 = scalar_lea.hbm %s2250_s3, 64 }
  0x2a   : > { %p1490_p4 = scmp.ne.s32.totalorder %s2250_s3, %s1489_s21  ;;  %p1496_p12 = scmp.lt.u32.totalorder %s1489_s21, %s2250_s3 }
  0x2c   : > { %p1492_p10 = pnand %p1490_p4, %p1892_p8 }
  0x2e   : > { %p1493_p11 = pneg %p1492_p10 }
  0x30   : > { %p1498_p13 = pnand %p1496_p12, %p1493_p11 }
  0x32   : > { %1501 = shalt.err (!%p1498_p13)
}
  0x33   : > { %s1502_s10 = scalar_lea.vmem %s1880_s14, 64  ;;  %p1510_p7 = scmp.lt.s32.totalorder %s1880_s14, %s1880_s14 }
  0x34   : > { %p1503_p0 = scmp.ne.s32.totalorder %s1880_s14, %s1502_s10  ;;  %p1511_p9 = scmp.lt.s32.totalorder %s1502_s10, %s1502_s10 }
  0x36   : > { %p1505_p2 = pnand %p1503_p0, %p1892_p8  ;;  %p1512_p4 = por %p1511_p9, %p1510_p7 }
  0x38   : > { %p1506_p5 = pneg %p1505_p2 }
  0x3a   : > { %p1513_p10 = pnand %p1512_p4, %p1506_p5 }
  0x3c   : > { %1516 = shalt.err (!%p1513_p10)
}
  0x3d   : > { %1361 = dma.hbm_to_vmem [thread:$0]  (!%p1876_p6), %s2250_s3, 64, %s1880_s14, [#allocation9]  }
  0x3e   : > { %s1517_s19 = scalar_lea.hbm %s2252_s5, 64 }
  0x3f   : > { %p1518_p11 = scmp.ne.s32.totalorder %s2252_s5, %s1517_s19  ;;  %p1524_p0 = scmp.lt.u32.totalorder %s1517_s19, %s2252_s5 }
  0x41   : > { %p1520_p12 = pnand %p1518_p11, %p1892_p8 }
  0x43   : > { %p1521_p13 = pneg %p1520_p12 }
  0x45   : > { %p1526_p2 = pnand %p1524_p0, %p1521_p13 }
  0x47   : > { %1529 = shalt.err (!%p1526_p2)
}
  0x48   : > { %s1530_s14 = scalar_lea.vmem %s1882_s17, 64  ;;  %p1538_p4 = scmp.lt.s32.totalorder %s1882_s17, %s1882_s17 }
  0x49   : > { %p1531_p5 = scmp.ne.s32.totalorder %s1882_s17, %s1530_s14  ;;  %p1539_p10 = scmp.lt.s32.totalorder %s1530_s14, %s1530_s14 }
  0x4b   : > { %p1533_p7 = pnand %p1531_p5, %p1892_p8  ;;  %p1540_p11 = por %p1539_p10, %p1538_p4 }
  0x4d   : > { %p1534_p9 = pneg %p1533_p7 }
  0x4f   : > { %p1541_p12 = pnand %p1540_p11, %p1534_p9 }
  0x51   : > { %1544 = shalt.err (!%p1541_p12)
}
  0x52   : > { %1367 = dma.hbm_to_vmem [thread:$0]  (!%p1876_p6), %s2252_s5, 64, %s1882_s17, [#allocation12]  }
  0x53   : > { %s1776_s10 = smov [#allocation7]   ;;  %s1777_s13 = smov [#allocation10]  }
  0x54   : > { %s258_s9 = sshll.u32 %s1776_s10, 4  ;;  %s280_s16 = sshll.u32 %s1777_s13, 4  ;;  %s259_s9 = int_to_ptr.vmem [resolvable:$true] %s258_s9  ;;  %s281_s16 = int_to_ptr.vmem [resolvable:$true] %s280_s16 }
  0x55   : > { %s1545_s20 = scalar_lea.hbm %s2249_s2, 32 }
  0x56   : > { %p1546_p13 = scmp.ne.s32.totalorder %s2249_s2, %s1545_s20  ;;  %p1552_p5 = scmp.lt.u32.totalorder %s1545_s20, %s2249_s2 }
  0x58   : > { %p1548_p0 = pnand %p1546_p13, %p1892_p8 }
  0x5a   : > { %p1549_p2 = pneg %p1548_p0 }
  0x5c   : > { %p1554_p7 = pnand %p1552_p5, %p1549_p2 }
  0x5e   : > { %1557 = shalt.err (!%p1554_p7)
}
  0x5f   : > { %s1558_s17 = scalar_lea.vmem %s259_s9, 32  ;;  %p1566_p11 = scmp.lt.s32.totalorder %s259_s9, %s259_s9 }
  0x60   : > { %p1559_p9 = scmp.ne.s32.totalorder %s259_s9, %s1558_s17  ;;  %p1567_p12 = scmp.lt.s32.totalorder %s1558_s17, %s1558_s17 }
  0x62   : > { %p1561_p4 = pnand %p1559_p9, %p1892_p8  ;;  %p1568_p1 = por %p1567_p12, %p1566_p11 }
  0x64   : > { %p1562_p10 = pneg %p1561_p4 }
  0x66   : > { %p1569_p3 = pnand %p1568_p1, %p1562_p10 }
  0x68   : > { %1572 = shalt.err (!%p1569_p3)
}
  0x69   : > { %1358 = dma.hbm_to_vmem [thread:$0]  (!%p1876_p6), %s2249_s2, 32, %s259_s9, [#allocation6]  }
  0x6a   : > { %s1573_s18 = scalar_lea.hbm %s2251_s4, 64 }
  0x6b   : > { %p1574_p13 = scmp.ne.s32.totalorder %s2251_s4, %s1573_s18  ;;  %p1580_p3 = scmp.lt.u32.totalorder %s1573_s18, %s2251_s4 }
  0x6d   : > { %p1576_p0 = pnand %p1574_p13, %p1892_p8 }
  0x6f   : > { %p1577_p1 = pneg %p1576_p0 }
  0x71   : > { %p1582_p2 = pnand %p1580_p3, %p1577_p1 }
  0x73   : > { %1585 = shalt.err (!%p1582_p2)
}
  0x74   : > { %s1586_s24 = scalar_lea.vmem %s281_s16, 64  ;;  %p1594_p4 = scmp.lt.s32.totalorder %s281_s16, %s281_s16 }
  0x75   : > { %p1587_p5 = scmp.ne.s32.totalorder %s281_s16, %s1586_s24  ;;  %p1595_p10 = scmp.lt.s32.totalorder %s1586_s24, %s1586_s24 }
  0x77   : > { %p1589_p7 = pnand %p1587_p5, %p1892_p8  ;;  %p1596_p11 = por %p1595_p10, %p1594_p4 }
  0x79   : > { %p1590_p9 = pneg %p1589_p7 }
  0x7b   : > { %p1597_p12 = pnand %p1596_p11, %p1590_p9 }
  0x7d   : > { %1600 = shalt.err (!%p1597_p12)
}
  0x7e   : > { %1364 = dma.hbm_to_vmem [thread:$0]  (!%p1876_p6), %s2251_s4, 64, %s281_s16, [#allocation9]  }
  0x7f   : > { %s1778_s17 = smov [#allocation13]   ;;  %s1601_s13 = scalar_lea.hbm %s2253_s6, 512 }
  0x80   : > { %s301_s25 = sshll.u32 %s1778_s17, 4  ;;  %p1602_p13 = scmp.ne.s32.totalorder %s2253_s6, %s1601_s13  ;;  %s302_s25 = int_to_ptr.vmem [resolvable:$true] %s301_s25 }
  0x81   : > { %p1608_p3 = scmp.lt.u32.totalorder %s1601_s13, %s2253_s6 }
  0x82   : > { %p1604_p0 = pnand %p1602_p13, %p1892_p8 }
  0x84   : > { %p1605_p1 = pneg %p1604_p0 }
  0x86   : > { %p1610_p2 = pnand %p1608_p3, %p1605_p1 }
  0x88   : > { %1613 = shalt.err (!%p1610_p2)
}
  0x89   : > { %s1614_s16 = scalar_lea.vmem %s302_s25, 512  ;;  %p1622_p4 = scmp.lt.s32.totalorder %s302_s25, %s302_s25 }
  0x8a   : > { %p1615_p5 = scmp.ne.s32.totalorder %s302_s25, %s1614_s16  ;;  %p1623_p10 = scmp.lt.s32.totalorder %s1614_s16, %s1614_s16 }
  0x8c   : > { %p1617_p7 = pnand %p1615_p5, %p1892_p8  ;;  %p1624_p11 = por %p1623_p10, %p1622_p4 }
  0x8e   : > { %p1618_p9 = pneg %p1617_p7 }
  0x90   : > { %p1625_p12 = pnand %p1624_p11, %p1618_p9 }
  0x92   : > { %1628 = shalt.err (!%p1625_p12)
}
  0x93   : > { %s1779_s22 = smov 64   ;;  %s1780_s24 = smov 4  }
  0x94   : > { %1370 = dma.hbm_to_vmem [thread:$0]  (!%p1876_p6), %s2253_s6, 512, %s302_s25, [#allocation12], %s1779_s22, %s1779_s22, %s1780_s24  }
  0x95   : > { %s1781_s17 = smov [#allocation14]   ;;  %s1629_s18 = scalar_lea.hbm %s2254_s7, 64 }
  0x96   : > { %s315_s26 = sshll.u32 %s1781_s17, 4  ;;  %p1630_p13 = scmp.ne.s32.totalorder %s2254_s7, %s1629_s18  ;;  %s316_s26 = int_to_ptr.vmem [resolvable:$true] %s315_s26 }
  0x97   : > { %p1636_p3 = scmp.lt.u32.totalorder %s1629_s18, %s2254_s7 }
  0x98   : > { %p1632_p0 = pnand %p1630_p13, %p1892_p8 }
  0x9a   : > { %p1633_p1 = pneg %p1632_p0 }
  0x9c   : > { %p1638_p2 = pnand %p1636_p3, %p1633_p1 }
  0x9e   : > { %1641 = shalt.err (!%p1638_p2)
}
  0x9f   : > { %s1642_s25 = scalar_lea.vmem %s316_s26, 64  ;;  %p1650_p4 = scmp.lt.s32.totalorder %s316_s26, %s316_s26 }
  0xa0   : > { %p1643_p5 = scmp.ne.s32.totalorder %s316_s26, %s1642_s25  ;;  %p1651_p10 = scmp.lt.s32.totalorder %s1642_s25, %s1642_s25 }
  0xa2   : > { %p1645_p7 = pnand %p1643_p5, %p1892_p8  ;;  %p1652_p11 = por %p1651_p10, %p1650_p4 }
  0xa4   : > { %p1646_p9 = pneg %p1645_p7 }
  0xa6   : > { %p1653_p12 = pnand %p1652_p11, %p1646_p9 }
  0xa8   : > { %1656 = shalt.err (!%p1653_p12)
}
  0xa9   : > { %1373 = dma.hbm_to_vmem [thread:$0]  (!%p1876_p6), %s2254_s7, 64, %s316_s26, [#allocation15]  }
  0xaa   : > { %s1174_s23 = sadd.s32 4294967294, %s1769_s30   ;;  %s2033_s15 = sadd.s32 1, %s1769_s30  }
  0xab   : > { %s35_s9 = sadd.s32 1, %s1765_s29  ;;  %s32_s14 = ssub.s32 %s1769_s30, %s2033_s15 }
  0xac   : > { %p42_p8 = scmp.ne.s32.totalorder %s1765_s29, %s1761_s28  ;;  %p33_p13 = scmp.eq.s32.totalorder %s32_s14, 0 }
  0xad   : > { %p43_p0 = scmp.eq.s32.totalorder %s1769_s30, 0  ;;  %p48_p1 = scmp.ne.s32.totalorder %s1761_s28, %s1757_s27 }
  0xae   : > { %p219_p3 = scmp.eq.s32.totalorder %s1860_s11, 1  ;;  %p2262_p5 = scmp.eq.s32.totalorder %s1860_s11, 0 }
  0xaf   : > { %s2045_s17 = scalar_select %p33_p13, %s1765_s29, %s35_s9  }
  0xb0   : > { %p44_p2 = por %p43_p0, %p42_p8  ;;  %p2049_p7 = por %p2262_p5, %p48_p1 }
  0xb1   : > { %p2053_p6 = por %p219_p3, %p42_p8  ;;  %p225_p9 = scmp.eq.s32.totalorder %s1174_s23, 1 }
  0xb2   : > { %p1389_p4 = scmp.lt.s32.totalorder %s1769_s30, 2  ;;  %s326_s13 = sand.u32 1, %s1765_s29  }
  0xb3   : > { %s2264_s26 = scalar_select %p2053_p6, 1, 0 }
  0xb4   : > { %p2059_p10 = por %p225_p9, %p48_p1  ;;  %s1184_s19 = sshll.u32 %s326_s13, 3 }
  0xb5   : > { %s1185_s20 = sshll.u32 %s1769_s30, 7  ;;  %s330_s22 = scalar_lea.vmem [#allocation2], %s1184_s19 }
  0xb6   : > { %s2265_s18 = scalar_select %p2059_p10, 1, 0 }
  0xb7   : > { %s2067_s25 = scalar_lea.hbm %s2247_s0, %s1185_s20  ;;  %s337_s24 = sshll.u32 %s330_s22, 4  ;;  %s2073_s24 = int_to_ptr.vmem [resolvable:$true] %s337_s24 }
  0xb8   : > { %p2069_p11 = pnand %p1389_p4, %p44_p2  ;;  %s327_s9 = scalar_lea.sflag [#allocation3], %s326_s13 }
  0xb9   : > { %s1657_s14 = scalar_lea.hbm %s2067_s25, 128  ;;  %s1662_s21 = scalar_lea.hbm %s2247_s0, 256 }
  0xba   : > { %p1658_p12 = scmp.ne.s32.totalorder %s2067_s25, %s1657_s14  ;;  %p1659_p8 = pneg %p2069_p11 }
  0xbb   : > { %p1663_p1 = scmp.lt.u32.totalorder %s2067_s25, %s2247_s0  ;;  %p1664_p3 = scmp.lt.u32.totalorder %s1662_s21, %s1657_s14 }
  0xbc   : > { %p1660_p13 = pnand %p1659_p8, %p1658_p12  ;;  %p1666_p5 = scmp.lt.u32.totalorder %s1657_s14, %s2067_s25 }
  0xbd   : > { %p1665_p2 = por %p1664_p3, %p1663_p1 }
  0xbe   : > { %p1661_p0 = pneg %p1660_p13 }
  0xbf   : > { %p1667_p9 = por %p1666_p5, %p1665_p2 }
  0xc1   : > { %p1668_p4 = pnand %p1667_p9, %p1661_p0 }
  0xc3   : > { %1671 = shalt.err (!%p1668_p4)
}
  0xc4   : > { %s1672_s13 = scalar_lea.vmem %s2073_s24, 128  ;;  %s1782_s20 = smov [#allocation2]  }
  0xc5   : > { %p1673_p12 = scmp.ne.s32.totalorder %s2073_s24, %s1672_s13  ;;  %s1677_s19 = sshll.u32 %s1782_s20, 4  ;;  %s1678_s19 = int_to_ptr.vmem [resolvable:$false] %s1677_s19 }
  0xc6   : > { %s1679_s16 = scalar_lea.vmem %s1678_s19, 256  ;;  %p1680_p6 = scmp.lt.s32.totalorder %s2073_s24, %s1678_s19 }
  0xc7   : > { %p1675_p13 = pnand %p1673_p12, %p1659_p8  ;;  %p1681_p1 = scmp.lt.s32.totalorder %s1679_s16, %s1672_s13 }
  0xc9   : > { %p1676_p10 = pneg %p1675_p13  ;;  %p1682_p3 = por %p1681_p1, %p1680_p6 }
  0xcb   : > { %p1683_p2 = pnand %p1682_p3, %p1676_p10 }
  0xcd   : > { %1686 = shalt.err (!%p1683_p2)
}
  0xce   : > { %1377 = dma.hbm_to_vmem [thread:$0]  (!%p2069_p11), %s2067_s25, 128, %s2073_s24, %s327_s9  }
  0xcf   : > { %p2267_p0 = scmp.ne.s32.totalorder %s2259_s12, 0 }
  0xd0   : > { %s2103_s14 = sand.u32 (!%p2267_p0), 1, %s1761_s28  }
  0xd1   : > { %346 = sbr.rel (%p2267_p0) target bundleno = 1074 (0x432), region = 52  ;;  %s1187_s21 = sshll.u32 (!%p2267_p0), %s2103_s14, 3 }
  0xd2   : > { %s349_s22 = scalar_lea.sflag (!%p2267_p0), [#allocation3], %s2103_s14  ;;  %s352_s13 = scalar_lea.vmem (!%p2267_p0), [#allocation2], %s1187_s21 }
  0xd8   : > { %1732 = dma.done.wait (%p2049_p7), %s349_s22, 128  }
  0xd9   : > { %1734 = vsyncadd (%p2049_p7), %s349_s22, 4294967168  ;;  %p2268_p6 = scmp.eq.s32.totalorder %s1860_s11, 0 }
  0xdb   : > { %1736 = dma.done.wait (%p2268_p6), [#allocation6], 544   ;;  %p2269_p10 = pmov %p2268_p6 }
  0xdc   : > { %p2270_p11 = pmov %p2268_p6 }
  0xdd   : > { %1738 = vsyncadd (%p2269_p10), [#allocation6], 4294966752 }
  0xde   : > { %1740 = dma.done.wait (%p2270_p11), [#allocation9], 128   ;;  %p2271_p8 = pmov %p2268_p6 }
  0xdf   : > { %p2272_p5 = pmov %p2268_p6 }
  0xe0   : > { %1742 = vsyncadd (%p2271_p8), [#allocation9], 4294967168 }
  0xe1   : > { %1744 = dma.done.wait (%p2272_p5), [#allocation12], 576   ;;  %p2273_p9 = pmov %p2272_p5 }
  0xe2   : > { %p2274_p7 = pmov %p2272_p5 }
  0xe3   : > { %1746 = vsyncadd (%p2273_p9), [#allocation12], 4294966720 }
  0xe4   : > { %1748 = dma.done.wait (%p2274_p7), [#allocation15], 64   ;;  %p2275_p4 = pmov %p2272_p5 }
  0xe5   : > { %v1783_v0 = vmov 0   ;;  %v1451_v1 = vld [vmem:[#allocation5 + $0x4] ss:$8 sps:$4 sm:$0xff]   ;;  %v1453_v2 = vld [vmem:[#allocation5] ss:$8 sps:$4 sm:$0xff]   ;;  %v414_v5 = vld [vmem:[%s352_s13] sm:$0xff]  ;;  %v422_v10 = vlaneseq }
  0xe6   : > { %1750 = vsyncadd (%p2275_p4), [#allocation15], 4294967232  ;;  %488 = vmatprep.mubr.bf16.mxu1 %v1783_v0  ;;  %456 = vmatprep.subr.bf16.mxu1 %v1451_v1  ;;  %v1454_v3 = vld [vmem:[#allocation5 + $0x14] ss:$8 sps:$4 sm:$0xff]   ;;  %v1456_v4 = vld [vmem:[#allocation5 + $0x10] ss:$8 sps:$4 sm:$0xff]   ;;  %v415_v8 = vpack.c.bf16 %v414_v5, %v414_v5 }
  0xe7   : > { %457 = vmatpush1.bf16.msra.mxu1 %v1453_v2  ;;  %v501_v6 = vld [vmem:[#allocation10] sm:$0xf]  ;;  %s1784_s12 = smov 64   ;;  %vm452_vm0 = vcmask 261120   ;;  %v1785_v9 = vmov 0.0   ;;  %v2134_v11 = vshrl.u32 %v422_v10, 7 }
  0xe8   : > { %458 = vmatprep.subr.bf16.mxu1 %v1454_v3  ;;  %v502_v7 = vunpack.c.l.bf16 %v501_v6  ;;  %1250 = vmatprep.subr.bf16.mxu0 %v1785_v9  ;;  %v420_v13 = vld [vmem:[#allocation7] sm:$0x3]  ;;  %v497_v16 = vld [vmem:[#allocation8] sm:$0xf]  ;;  %vm1786_vm1 = vmmov 0   ;;  %vm591_vm2 = vcmask 1043456  }
  0xe9   : > { %v424_v12 = vsub.s32 0, %v2134_v11  ;;  %v428_v14 = vsub.s32 1, %v2134_v11  ;;  %1252 = vmatprep.mubr.msk.bf16.mxu0 %vm1786_vm1, %v1785_v9  ;;  %v1203_v20 = vld [vmem:[#allocation14] ss:$0 sm:$0xff]  ;;  %v1211_v21 = vld [vmem:[#allocation14 + $0x1] ss:$0 sm:$0xff]  ;;  %v498_v23 = vunpack.c.l.bf16 %v497_v16 }
  0xea   : > { %504 = vrot.lane.b32.xlu0 %v502_v7, %s1784_s12  ;;  %v1214_v25 = vld [vmem:[#allocation14 + $0x2] ss:$0 sm:$0xff]  ;;  %v1217_v26 = vld [vmem:[#allocation14 + $0x3] ss:$0 sm:$0xff]  ;;  %s1787_s10 = smov 48   ;;  %s1788_s25 = smov 32  }
  0xeb   : > { %459 = vmatpush1.bf16.msra.mxu1 %v1456_v4  ;;  %v425_v15 = vrot.slane %v420_v13, %v424_v12  ;;  %v429_v17 = vrot.slane %v420_v13, %v428_v14  ;;  %s1789_s24 = smov 112   ;;  %s1790_s23 = smov 16   ;;  %vm531_vm3 = vcmask 130048   ;;  %v524_v57 = vand.u32 127, %v422_v10  ;;  %v1457_v63 = vld [vmem:[#allocation13] sm:$0xff]   ;;  %v1458_v2 = vld [vmem:[#allocation13 + $0x8] sm:$0xff]  }
  0xec   : > { %1244 = vmatprep.subr.bf16.mxu1 %v1785_v9  ;;  %s1791_s9 = smov 96   ;;  %s1792_s20 = smov 80   ;;  %vm587_vm5 = vcmask 64512   ;;  %v509_v3 = vld [vmem:[#allocation11] sm:$0xf]  ;;  %v1459_v7 = vld [vmem:[#allocation13 + $0x10] sm:$0xff]  }
  0xed   : > { %vm525_vm4 = vcmp.ge.s32.totalorder %v2134_v11, %v524_v57  ;;  %v1460_v11 = vld [vmem:[#allocation13 + $0x18] sm:$0xff]   ;;  %vm659_vm6 = vcmask 523264   ;;  %s1220_s19 = sshll.u32 %s1860_s11, 7  ;;  %s412_s16 = scalar_lea.vmem [#allocation16], %s1187_s21 }
  0xee   : > { %1200 = vmatmul.mubr.msk.bf16.vlgmr.msra.gmra.mrb[0].mxu1 %vm452_vm0, %v415_v8  ;;  %v1201_v58 = vsel %vm525_vm4, 1.0, %v1785_v9  ;;  %v510_v8 = vunpack.c.l.bf16 %v509_v3  ;;  %s1037_s22 = sshll.u32 %s412_s16, 4  ;;  %p2276_p13 = scmp.ne.s32.totalorder %s2264_s26, 0  ;;  %s2204_s22 = int_to_ptr.vmem [resolvable:$true] %s1037_s22 }
  0xef   : > { %1246 = vmatprep.mubr.msk.bf16.mxu1 %vm1786_vm1, %v1785_v9  ;;  %s1687_s11 = scalar_lea.vmem %s2204_s22, 128  ;;  %s1793_s21 = smov [#allocation16]  }
  0xf0   : > { %p1688_p12 = scmp.ne.s32.totalorder %s2204_s22, %s1687_s11 }
  0xf2   : > { %p1689_p1 = pnand %p1688_p12, %p2276_p13 }
  0xf4   : > { %p1690_p3 = pneg %p1689_p1 }
 0x15c   : > { %v505_v19 = vpop.permute.xlu0 %504 }
 0x1c1   : > { %v490_v18 = vpop.f32.mrb[0].mxu1 }
 0x1c2   : > { %v2142_v22 = vadd.f32 %v490_v18, %v425_v15  ;;  %v492_v24 = vpop.f32.mrb[1].mxu1 }
 0x1c3   : > { %v493_v27 = vadd.f32 %v492_v24, %v429_v17  ;;  %v494_v28 = vpop.f32.mrb[2].mxu1 }
 0x1c4   : > { %v507_v29 = vmul.f32 %v505_v19, %v2142_v22  ;;  %v495_v30 = vpop.f32.mrb[3].mxu1  ;;  %v499_v35 = vmul.f32 %v498_v23, %v2142_v22  ;;  %v511_v12 = vmul.f32 %v510_v8, %v2142_v22 }
 0x1c5   : > { %v585_v31 = vmul.f32 %v1203_v20, %v493_v27  ;;  %v761_v32 = vmul.f32 %v1211_v21, %v493_v27  ;;  %v867_v33 = vmul.f32 %v1214_v25, %v493_v27  ;;  %v973_v34 = vmul.f32 %v1217_v26, %v493_v27 }
 0x1c6   : > { %v508_v36 = vpack.c.bf16 %v507_v29, %v507_v29  ;;  %v500_v45 = vpack.c.bf16 %v499_v35, %v499_v35  ;;  %v512_v16 = vpack.c.bf16 %v511_v12, %v511_v12 }
 0x1c7   : > { %v586_v37 = vpack.c.bf16 %v585_v31, %v585_v31  ;;  %v762_v38 = vpack.c.bf16 %v761_v32, %v761_v32  ;;  %v868_v39 = vpack.c.bf16 %v867_v33, %v867_v33  ;;  %v974_v40 = vpack.c.bf16 %v973_v34, %v973_v34 }
 0x1c8   : > { %706 = vrot.lane.b32.xlu1 %v508_v36, %s1787_s10  ;;  %529 = vrot.lane.b32.xlu0 %v508_v36, %s1784_s12  ;;  %s2202_s10 = scalar_lea.hbm %s2255_s8, %s1220_s19 }
 0x1c9   : > { %v593_v41 = vsel %vm591_vm2, %v586_v37, 0  ;;  %v2147_v42 = vsel %vm591_vm2, %v762_v38, 0  ;;  %v2149_v43 = vsel %vm591_vm2, %v868_v39, 0  ;;  %v2151_v44 = vsel %vm591_vm2, %v974_v40, 0 }
 0x1ca   : > { %1251 = vmatpush3.bf16.msra.mxu0 %v593_v41 }
 0x1cb   : > { %1256 = vmatprep.subr.bf16.mxu0 %v1785_v9 }
 0x1cc   : > { %812 = vrot.lane.b32.xlu0 %v508_v36, %s1788_s25  ;;  %704 = vrot.lane.b32.xlu1 %v500_v45, %s1789_s24  ;;  %s1024_s25 = scalar_lea.sflag [#allocation4], %s2103_s14  ;;  %s1691_s24 = sshll.u32 %s1793_s21, 4  ;;  %s1692_s24 = int_to_ptr.vmem [resolvable:$false] %s1691_s24 }
 0x1cd   : > { %p1694_p2 = scmp.lt.s32.totalorder %s2204_s22, %s1692_s24 }
 0x1d0   : > { %918 = vrot.lane.b32.xlu0 %v508_v36, %s1790_s23  ;;  %810 = vrot.lane.b32.xlu1 %v500_v45, %s1791_s9  ;;  %s1693_s23 = scalar_lea.vmem %s1692_s24, 256 }
 0x1d1   : > { %p1695_p0 = scmp.lt.s32.totalorder %s1693_s23, %s1687_s11 }
 0x1d3   : > { %p1696_p6 = por %p1695_p0, %p1694_p2 }
 0x1d4   : > { %916 = vrot.lane.b32.xlu1 %v500_v45, %s1792_s20 }
 0x1d5   : > { %p1697_p10 = pnand %p1696_p6, %p1690_p3 }
 0x23a   : > { %v530_v46 = vpop.permute.xlu0 %529  ;;  %v707_v48 = vpop.permute.xlu1 %706 }
 0x23b   : > { %v536_v47 = vsel %vm531_vm3, %v530_v46, 0  ;;  %v712_v49 = vsel %vm531_vm3, %v707_v48, 0 }
 0x23c   : > { %1245 = vmatpush3.bf16.xpose.msra.mxu1 %v536_v47 }
 0x23d   : > { %1268 = vmatprep.subr.bf16.mxu1 %v1785_v9 }
 0x23e   : > { %v813_v50 = vpop.permute.xlu0 %812  ;;  %v705_v51 = vpop.permute.xlu1 %704 }
 0x23f   : > { %v818_v52 = vsel %vm531_vm3, %v813_v50, 0 }
 0x242   : > { %v919_v53 = vpop.permute.xlu0 %918  ;;  %v811_v54 = vpop.permute.xlu1 %810 }
 0x243   : > { %1247 = vmatmul.mubr.msk.bf16.vlgmr.msra.gmra.mrb[4].mxu1 %vm531_vm3, %v500_v45  ;;  %v924_v55 = vsel %vm531_vm3, %v919_v53, 0 }
 0x244   : > { %1269 = vmatpush3.bf16.xpose.msra.mxu1 %v712_v49  ;;  %1270 = vmatprep.mubr.msk.bf16.mxu1 %vm1786_vm1, %v1785_v9 }
 0x245   : > { %1280 = vmatprep.subr.bf16.mxu1 %v1785_v9 }
 0x246   : > { %v917_v56 = vpop.permute.xlu1 %916 }
 0x24b   : > { %1271 = vmatmul.mubr.msk.bf16.vlgmr.msra.gmra.mrb[8].mxu1 %vm531_vm3, %v705_v51 }
 0x24c   : > { %1281 = vmatpush3.bf16.xpose.msra.mxu1 %v818_v52  ;;  %1282 = vmatprep.mubr.msk.bf16.mxu1 %vm1786_vm1, %v1785_v9 }
 0x24d   : > { %1292 = vmatprep.subr.bf16.mxu1 %v1785_v9 }
 0x253   : > { %1283 = vmatmul.mubr.msk.bf16.vlgmr.msra.gmra.mrb[12].mxu1 %vm531_vm3, %v811_v54 }
 0x254   : > { %1293 = vmatpush3.bf16.xpose.msra.mxu1 %v924_v55  ;;  %1294 = vmatprep.mubr.msk.bf16.mxu1 %vm1786_vm1, %v1785_v9 }
 0x25b   : > { %1295 = vmatmul.mubr.msk.bf16.vlgmr.msra.gmra.mrb[16].mxu1 %vm531_vm3, %v917_v56 }
 0x316   : > { %v572_v59 = vpop.f32.mrb[4].mxu1 }
 0x317   : > { %v578_v60 = vmul.f32 %v1201_v58, %v572_v59  ;;  %v1248_v61 = vpop.f32.mrb[5].mxu1 }
 0x318   : > { %v575_v62 = vpop.f32.mrb[6].mxu1 }
 0x319   : > { %v579_v0 = vpack.c.bf16 %v578_v60, %v578_v60  ;;  %v1249_v1 = vpop.f32.mrb[7].mxu1 }
 0x31b   : > { %1253 = vmatmul.mubr.msk.bf16.vlgmr.msra.gmra.mrb[0].mxu0 %vm587_vm5, %v579_v0 }
 0x31c   : > { %1257 = vmatpush3.bf16.msra.mxu0 %v1457_v63  ;;  %1264 = vmatprep.mubr.msk.bf16.mxu0 %vm1786_vm1, %v1785_v9 }
 0x31d   : > { %1258 = vmatprep.subr.bf16.mxu0 %v1785_v9 }
 0x31e   : > { %v748_v4 = vpop.f32.mrb[8].mxu1 }
 0x31f   : > { %v1272_v5 = vpop.f32.mrb[9].mxu1  ;;  %v754_v21 = vmul.f32 %v1201_v58, %v748_v4 }
 0x320   : > { %1259 = vmatpush3.bf16.msra.mxu0 %v1458_v2  ;;  %v751_v6 = vpop.f32.mrb[10].mxu1 }
 0x321   : > { %v1273_v10 = vpop.f32.mrb[11].mxu1  ;;  %1260 = vmatprep.subr.bf16.mxu0 %v1785_v9  ;;  %v755_v23 = vpack.c.bf16 %v754_v21, %v754_v21 }
 0x324   : > { %1261 = vmatpush3.bf16.msra.mxu0 %v1459_v7 }
 0x325   : > { %1262 = vmatprep.subr.bf16.mxu0 %v1785_v9 }
 0x326   : > { %v854_v13 = vpop.f32.mrb[12].mxu1 }
 0x327   : > { %v1284_v14 = vpop.f32.mrb[13].mxu1  ;;  %v860_v24 = vmul.f32 %v1201_v58, %v854_v13 }
 0x328   : > { %1263 = vmatpush3.bf16.msra.mxu0 %v1460_v11  ;;  %v857_v15 = vpop.f32.mrb[14].mxu1 }
 0x329   : > { %v1285_v17 = vpop.f32.mrb[15].mxu1  ;;  %1274 = vmatprep.subr.bf16.mxu0 %v1785_v9  ;;  %v861_v25 = vpack.c.bf16 %v860_v24, %v860_v24 }
 0x32b   : > { %1265 = vmatmul.mubr.msk.bf16.vlgmr.msra.gmra.mrb[0].mxu0 %vm659_vm6, %v512_v16 }
 0x32c   : > { %1275 = vmatpush3.bf16.msra.mxu0 %v2147_v42  ;;  %1276 = vmatprep.mubr.msk.bf16.mxu0 %vm1786_vm1, %v1785_v9 }
 0x32d   : > { %1286 = vmatprep.subr.bf16.mxu0 %v1785_v9 }
 0x32e   : > { %v960_v18 = vpop.f32.mrb[16].mxu1 }
 0x32f   : > { %v1296_v19 = vpop.f32.mrb[17].mxu1  ;;  %v966_v26 = vmul.f32 %v1201_v58, %v960_v18 }
 0x330   : > { %v963_v20 = vpop.f32.mrb[18].mxu1 }
 0x331   : > { %v1297_v22 = vpop.f32.mrb[19].mxu1  ;;  %v967_v27 = vpack.c.bf16 %v966_v26, %v966_v26 }
 0x337   : > { %1277 = vmatmul.mubr.msk.bf16.vlgmr.msra.gmra.mrb[0].mxu0 %vm587_vm5, %v755_v23 }
 0x338   : > { %1287 = vmatpush3.bf16.msra.mxu0 %v2149_v43  ;;  %1288 = vmatprep.mubr.msk.bf16.mxu0 %vm1786_vm1, %v1785_v9 }
 0x339   : > { %1298 = vmatprep.subr.bf16.mxu0 %v1785_v9 }
 0x343   : > { %1289 = vmatmul.mubr.msk.bf16.vlgmr.msra.gmra.mrb[0].mxu0 %vm587_vm5, %v861_v25 }
 0x344   : > { %1299 = vmatpush3.bf16.msra.mxu0 %v2151_v44  ;;  %1300 = vmatprep.mubr.msk.bf16.mxu0 %vm1786_vm1, %v1785_v9 }
 0x34f   : > { %1301 = vmatmul.mubr.msk.bf16.vlgmr.msra.gmra.mrb[0].mxu0 %vm587_vm5, %v967_v27 }
 0x422   : > { %v1015_v9 = vpop.f32.mrb[0].mxu0 }
 0x423   : > { %1022 = vst.msk [vmem:[%s412_s16] sm:$0xff] %vm452_vm0, %v1015_v9  ;;  %v1302_v28 = vpop.f32.mrb[1].mxu0 }
 0x424   : > { %v1018_v29 = vpop.f32.mrb[2].mxu0 }
 0x425   : > { %1700 = shalt.err (!%p1697_p10)
}
 0x426   : > { %s1701_s14 = scalar_lea.hbm %s2202_s10, 128  ;;  %s1705_s19 = scalar_lea.hbm %s2255_s8, 256 }
 0x427   : > { %p1702_p11 = scmp.ne.s32.totalorder %s2202_s10, %s1701_s14  ;;  %p1706_p9 = scmp.lt.u32.totalorder %s2202_s10, %s2255_s8 }
 0x428   : > { %p1707_p7 = scmp.lt.u32.totalorder %s1705_s19, %s1701_s14  ;;  %p1709_p12 = scmp.lt.u32.totalorder %s1701_s14, %s2202_s10 }
 0x429   : > { %p1703_p8 = pnand %p1702_p11, %p2276_p13 }
 0x42a   : > { %p1708_p4 = por %p1707_p7, %p1706_p9 }
 0x42b   : > { %p1704_p5 = pneg %p1703_p8 }
 0x42c   : > { %p1710_p1 = por %p1709_p12, %p1708_p4 }
 0x42e   : > { %p1711_p3 = pnand %p1710_p1, %p1704_p5 }
 0x430   : > { %1714 = shalt.err (!%p1711_p3)
}
 0x431   : > { %1350 = dma.vmem_to_hbm [thread:$0]  (%p2276_p13), %s2204_s22, 128, %s2202_s10, %s1024_s25   ;;  %v1303_v30 = vpop.f32.mrb[3].mxu0 }
 0x432 PF: > { %s1049_s12 = sand.u32 1, %s1757_s27   ;;  %p2277_p2 = scmp.ne.s32.totalorder %s2265_s18, 0 }
 0x433   : > { %p2278_p0 = scmp.ge.s32.totalorder %s1769_s30, 2  ;;  %s1050_s11 = scalar_lea.sflag [#allocation4], %s1049_s12 }
 0x435   : > { %p1379_p6 = pnand %p2278_p0, %p2277_p2 }
 0x437   : > { %1752 = dma.done.wait (!%p1379_p6), %s1050_s11, 128  }
 0x438   : > { %1754 = vsyncadd (!%p1379_p6), %s1050_s11, 4294967168  ;;  %p25_p10 = scmp.ge.s32.totalorder %s2033_s15, 4   ;;  %s2279_s27 = smov %s1761_s28 }
 0x439   : > { %s2280_s28 = smov %s1765_s29  ;;  %s2281_s29 = smov %s2045_s17 }
 0x43a   : > { %s2282_s30 = smov %s2033_s15  ;;  %27 = sbr.rel (!%p25_p10) target bundleno = 9 (0x9), region = 125 }
 0x441   :  { %1055 = vsyncpa [#allocation3], 1 }
 0x442   :  { %1057 = vsyncpa [#allocation3 + $0x1], 1 }
 0x443   :  { %1058 = vsyncpa [#allocation6], 1 }
 0x444   :  { %1059 = vsyncpa [#allocation9], 1 }
 0x445   :  { %1060 = vsyncpa [#allocation12], 1 }
 0x446   :  { %1061 = vsyncpa [#allocation15], 1 }
 0x447   :  { %1062 = vsyncpa [#allocation4], 1 }
 0x448   :  { %1064 = vsyncpa [#allocation4 + $0x1], 1 }

</bundles_post_ra>
